<compile_context>
chip_gen: v7x
topology: tpu7x:2x2x1
jax: 0.10.0
libtpu: 0.0.40
codegen_flags: <defaults>
</compile_context>

<pallas_src>
import jax
import jax.numpy as jnp
from jax.experimental import pallas as pl
from jax.experimental.pallas import tpu as pltpu


def _mish_kernel(x_ref, o_ref):
    x = x_ref[...].astype(jnp.float32)
    # tanh(softplus(x)) = (s^2 - 1) / (s^2 + 1) with s = 1 + e^x
    #                   = t*(t+2) / (t*(t+2) + 2),  t = e^x.
    # Clamp the exponent at 20 (PyTorch softplus threshold); for x > 20 the exact
    # answer is x to well below f32 precision, handled by the final `where`.
    t = jnp.exp(jnp.minimum(x, 20.0))
    num = t * (t + 2.0)
    # approx=False keeps full f32 accuracy; flip to approx=True for extra EUP
    # headroom at ~1e-4 relative error if this kernel ever becomes EUP-bound.
    inv = pl.reciprocal(num + 2.0, approx=False)
    y = x * num * inv
    o_ref[...] = jnp.where(x > 20.0, x, y).astype(o_ref.dtype)


def _round_up(a, b):
    return ((a + b - 1) // b) * b


def _choose_layout(n_elems, max_lanes=1024, max_block_rows=512):
    """Pick a lane-dense 2-D layout and block size for an elementwise kernel."""
    # Lane width: multiple of 128, as wide as possible while still leaving at
    # least ~2 row-blocks of real data (so the grid can pipeline / use 2 TCs).
    lanes = max_lanes
    while lanes > 128 and n_elems < 2 * 8 * lanes:
        lanes //= 2
    rows = pl.cdiv(n_elems, lanes)
    # Block rows: multiple of 8, capped at 512 (512x1024 f32 = 2 MiB/buffer),
    # and small enough that the grid has >= 2 steps when the data allows it.
    block_rows = min(max_block_rows, _round_up(max(rows // 2, 1), 8))
    padded_rows = _round_up(rows, block_rows)
    return lanes, block_rows, padded_rows


def mish(x):
    """Apply Mish elementwise to any-shaped tensor via a Pallas TPU kernel."""
    orig_shape = x.shape
    flat = x.reshape(-1)
    n_elems = flat.shape[0]

    lanes, block_rows, padded_rows = _choose_layout(n_elems)
    padded_elems = padded_rows * lanes
    if padded_elems != n_elems:
        flat = jnp.pad(flat, (0, padded_elems - n_elems))
    x2d = flat.reshape(padded_rows, lanes)

    grid = (padded_rows // block_rows,)
    itemsize = jnp.dtype(x.dtype).itemsize

    out2d = pl.pallas_call(
        _mish_kernel,
        out_shape=jax.ShapeDtypeStruct((padded_rows, lanes), x.dtype),
        grid=grid,
        in_specs=[pl.BlockSpec((block_rows, lanes), lambda i: (i, 0))],
        out_specs=pl.BlockSpec((block_rows, lanes), lambda i: (i, 0)),
        compiler_params=pltpu.CompilerParams(
            dimension_semantics=("parallel",),
        ),
        cost_estimate=pl.CostEstimate(
            flops=5 * n_elems,
            transcendentals=n_elems,
            bytes_accessed=2 * n_elems * itemsize,
        ),
    )(x2d)

    return out2d.reshape(-1)[:n_elems].reshape(orig_shape)


def _mish_ref(x):
    # Pure-JAX reference (matches PyTorch x * tanh(F.softplus(x))).
    return x * jnp.tanh(jax.nn.softplus(x))


if __name__ == "__main__":
    key = jax.random.PRNGKey(0)
    x = jax.random.normal(key, (2, 4, 16, 16), dtype=jnp.float32) * 3.0
    # Exercise both sides of the softplus threshold.
    x = x.at[0, 0, 0, 0].set(25.0)
    x = x.at[0, 0, 0, 1].set(-25.0)

    y = mish(x)
    jax.block_until_ready(y)

    y_ref = _mish_ref(x)
    assert y.shape == x.shape and y.dtype == x.dtype
    assert jnp.allclose(y, y_ref, atol=1e-5, rtol=1e-5)

    print("KERNEL_OK")
</pallas_src>

<mosaic_0001>
module attributes {stable_mosaic.version = 11 : i64} {
  func.func @_mish_kernel(%arg0: i32, %arg1: memref<8x128xf32, #tpu.memory_space<vmem>>, %arg2: memref<8x128xf32, #tpu.memory_space<vmem>>) attributes {dimension_semantics = [#tpu.dimension_semantics<parallel>], iteration_bounds = array<i64: 2>, scalar_prefetch = 0 : i64, scratch_operands = 0 : i64, tpu.core_type = #tpu.core_type<tc>, window_params = [{transform_indices = @transform_0, window_bounds = array<i64: 8, 128>}, {transform_indices = @transform_1, window_bounds = array<i64: 8, 128>}]} {
    %c0 = arith.constant 0 : index
    %c0_0 = arith.constant 0 : index
    %0 = vector.load %arg1[%c0, %c0_0] : memref<8x128xf32, #tpu.memory_space<vmem>>, vector<8x128xf32>
    %cst = arith.constant 2.000000e+01 : f32
    %1 = vector.broadcast %cst : f32 to vector<8x128xf32>
    %2 = arith.minimumf %0, %1 : vector<8x128xf32>
    %3 = math.exp %2 : vector<8x128xf32>
    %cst_1 = arith.constant 2.000000e+00 : f32
    %4 = vector.broadcast %cst_1 : f32 to vector<8x128xf32>
    %5 = arith.addf %3, %4 : vector<8x128xf32>
    %6 = arith.mulf %3, %5 : vector<8x128xf32>
    %cst_2 = arith.constant 2.000000e+00 : f32
    %7 = vector.broadcast %cst_2 : f32 to vector<8x128xf32>
    %8 = arith.addf %6, %7 : vector<8x128xf32>
    %9 = tpu.reciprocal %8 : vector<8x128xf32> -> vector<8x128xf32>
    %10 = arith.mulf %0, %6 : vector<8x128xf32>
    %11 = arith.mulf %10, %9 : vector<8x128xf32>
    %cst_3 = arith.constant 2.000000e+01 : f32
    %12 = vector.broadcast %cst_3 : f32 to vector<8x128xf32>
    %13 = arith.cmpf ogt, %0, %12 : vector<8x128xf32>
    %14 = arith.select %13, %0, %11 : vector<8x128xi1>, vector<8x128xf32>
    %c0_4 = arith.constant 0 : index
    %c0_5 = arith.constant 0 : index
    %15 = vector.load %arg2[%c0_4, %c0_5] : memref<8x128xf32, #tpu.memory_space<vmem>>, vector<8x128xf32>
    tpu.vector_store %arg2[%c0_4, %c0_5], %14 {strides = array<i32>} : memref<8x128xf32, #tpu.memory_space<vmem>>, vector<8x128xf32>,
    return
  }
  func.func @transform_0(%arg0: i32) -> (i32, i32) {
    %c0_i32 = arith.constant 0 : i32
    %c0_i32_0 = arith.constant 0 : i32
    return %arg0, %c0_i32 : i32, i32
  }
  func.func @transform_1(%arg0: i32) -> (i32, i32) {
    %c0_i32 = arith.constant 0 : i32
    %c0_i32_0 = arith.constant 0 : i32
    return %arg0, %c0_i32 : i32, i32
  }
}

</mosaic_0001>

<bundles_post_ra>
// kernel: tpu_custom_call.1
= control target key start
LH: loop header
LB: loop body
LE: loop exit
PB: predicated region body
PF: predicated region fallthrough
CT: control target
= control target key end

     0   :  { %6 = vsyncpa [#allocation3], 0  ;;  %s562_s0 = inlined_call_operand.hbm [shape: f32[16,128], index: 0, kind: input, shape index: {}]   ;;  %s563_s1 = inlined_call_operand.hbm [shape: f32[16,128], index: 1, kind: output, shape index: {}]  }
   0x1   :  { %8 = vsyncpa [#allocation3 + $0x1], 0 }
   0x2   :  { %9 = vsyncpa [#allocation4], 0 }
   0x3   :  { %11 = vsyncpa [#allocation4 + $0x1], 0  ;;  %s401_s6 = smov 0   ;;  %s403_s7 = smov 0  }
   0x4   :  { %s405_s8 = smov 0   ;;  %s407_s9 = smov 0  }
   0x5 LB: > { %s422_s10 = sadd.s32 4294967295, %s387_s9   ;;  %s229_s11 = sadd.s32 4294967294, %s387_s9   ;;  %s387_s9 = sphi %s407_s9, %s578_s9   ;;  %s383_s8 = sphi %s405_s8, %s577_s8   ;;  %s379_s7 = sphi %s403_s7, %s576_s7   ;;  %s375_s6 = sphi %s401_s6, %s575_s6  }
   0x6   : > { %s426_s12 = sadd.s32 1, %s387_s9   ;;  %s24_s13 = sadd.s32 1, %s383_s8 }
   0x7   : > { %s21_s14 = ssub.s32 %s387_s9, %s426_s12  ;;  %p31_p0 = scmp.ne.s32.totalorder %s383_s8, %s379_s7 }
   0x8   : > { %p22_p1 = scmp.eq.s32.totalorder %s21_s14, 0  ;;  %p32_p2 = scmp.eq.s32.totalorder %s387_s9, 0 }
   0x9   : > { %p37_p3 = scmp.ne.s32.totalorder %s379_s7, %s375_s6  ;;  %p38_p4 = scmp.eq.s32.totalorder %s422_s10, 0 }
   0xa   : > { %s438_s15 = scalar_select %p22_p1, %s383_s8, %s24_s13  }
   0xb   : > { %p440_p5 = por %p32_p2, %p31_p0  ;;  %p444_p6 = por %p38_p4, %p37_p3 }
   0xc   : > { %p61_p7 = scmp.eq.s32.totalorder %s422_s10, 1  ;;  %p67_p8 = scmp.eq.s32.totalorder %s229_s11, 1 }
   0xd   : > { %p253_p10 = scmp.lt.s32.totalorder %s387_s9, 2  ;;  %s87_s20 = sand.u32 1, %s383_s8  }
   0xe   : > { %p451_p11 = por %p61_p7, %p31_p0  ;;  %p455_p12 = por %p67_p8, %p37_p3 }
   0xf   : > { %s233_s21 = sshll.u32 %s387_s9, 7  ;;  %s232_s22 = sshll.u32 %s87_s20, 3 }
  0x10   : > { %s567_s18 = scalar_select %p451_p11, 1, 0 }
  0x11   : > { %s568_s19 = scalar_select %p455_p12, 1, 0 }
  0x12   : > { %s464_s25 = scalar_lea.hbm %s562_s0, %s233_s21  ;;  %s91_s26 = scalar_lea.vmem [#allocation2], %s232_s22 }
  0x13   : > { %s98_s27 = sshll.u32 %s91_s26, 4  ;;  %p468_p13 = pnand %p253_p10, %p440_p5  ;;  %s472_s27 = int_to_ptr.vmem [resolvable:$true] %s98_s27 }
  0x14   : > { %s88_s29 = scalar_lea.sflag [#allocation3], %s87_s20  ;;  %s291_s30 = scalar_lea.hbm %s464_s25, 128 }
  0x15   : > { %p292_p2 = scmp.ne.s32.totalorder %s464_s25, %s291_s30  ;;  %p293_p3 = pneg %p468_p13 }
  0x16   : > { %s296_s4 = scalar_lea.hbm %s562_s0, 256  ;;  %p297_p5 = scmp.lt.u32.totalorder %s464_s25, %s562_s0 }
  0x17   : > { %p294_p4 = pnand %p293_p3, %p292_p2  ;;  %p298_p8 = scmp.lt.u32.totalorder %s296_s4, %s291_s30 }
  0x18   : > { %p300_p9 = scmp.lt.u32.totalorder %s291_s30, %s464_s25 }
  0x19   : > { %p295_p7 = pneg %p294_p4  ;;  %p299_p10 = por %p298_p8, %p297_p5 }
  0x1b   : > { %p301_p0 = por %p300_p9, %p299_p10 }
  0x1d   : > { %p302_p1 = pnand %p301_p0, %p295_p7 }
  0x1f   : > { %305 = shalt.err (!%p302_p1)
}
  0x20   : > { %s306_s13 = scalar_lea.vmem %s472_s27, 128  ;;  %s389_s14 = smov [#allocation2]  }
  0x21   : > { %p307_p2 = scmp.ne.s32.totalorder %s472_s27, %s306_s13  ;;  %s311_s16 = sshll.u32 %s389_s14, 4  ;;  %s312_s16 = int_to_ptr.vmem [resolvable:$false] %s311_s16 }
  0x22   : > { %s313_s20 = scalar_lea.vmem %s312_s16, 256  ;;  %p314_p11 = scmp.lt.s32.totalorder %s472_s27, %s312_s16 }
  0x23   : > { %p309_p4 = pnand %p307_p2, %p293_p3  ;;  %p315_p5 = scmp.lt.s32.totalorder %s313_s20, %s306_s13 }
  0x25   : > { %p310_p12 = pneg %p309_p4  ;;  %p316_p8 = por %p315_p5, %p314_p11 }
  0x27   : > { %p317_p9 = pnand %p316_p8, %p310_p12 }
  0x29   : > { %320 = shalt.err (!%p317_p9)
}
  0x2a   : > { %248 = dma.hbm_to_vmem [thread:$0]  (!%p468_p13), %s464_s25, 128, %s472_s27, %s88_s29  }
  0x2b   : > { %p570_p0 = scmp.lt.s32.totalorder %s387_s9, 3  ;;  %p571_p1 = scmp.ge.s32.totalorder %s387_s9, 1 }
  0x2d   : > { %p104_p3 = pnand %p571_p1, %p570_p0 }
  0x2e   : > { %s506_s21 = sand.u32 (!%p104_p3), 1, %s379_s7  }
  0x2f   : > { %107 = sbr.rel (%p104_p3) target bundleno = 105 (0x69), region = 24  ;;  %s235_s22 = sshll.u32 (!%p104_p3), %s506_s21, 3 }
  0x30   : > { %s110_s23 = scalar_lea.sflag (!%p104_p3), [#allocation3], %s506_s21  ;;  %s113_s24 = scalar_lea.vmem (!%p104_p3), [#allocation2], %s235_s22 }
  0x36   : > { %366 = dma.done.wait (%p444_p6), %s110_s23, 128  }
  0x37   : > { %368 = vsyncadd (%p444_p6), %s110_s23, 4294967168  ;;  %v132_v0 = vld [vmem:[%s113_s24] sm:$0xff]  ;;  %s131_s25 = scalar_lea.vmem [#allocation5], %s235_s22  ;;  %s238_s27 = sshll.u32 %s422_s10, 7 }
  0x38   : > { %v133_v1 = vmin.f32 %v132_v0, 20.0  ;;  %s159_s26 = sshll.u32 %s131_s25, 4  ;;  %vm142_vm0 = vcmp.gt.f32.partialorder %v132_v0, 20.0  ;;  %s520_s29 = scalar_lea.hbm %s563_s1, %s238_s27  ;;  %s515_s26 = int_to_ptr.vmem [resolvable:$true] %s159_s26 }
  0x39   : > { %s146_s30 = scalar_lea.sflag [#allocation4], %s506_s21  ;;  %s321_s2 = scalar_lea.vmem %s515_s26, 128 }
  0x3a   : > { %v134_v2 = vmul.f32 1.442695, %v133_v1  ;;  %p322_p6 = scmp.ne.s32.totalorder %s515_s26, %s321_s2  ;;  %p572_p11 = scmp.ne.s32.totalorder %s567_s18, 0 }
  0x3b   : > { %s390_s10 = smov [#allocation5]  }
  0x3c   : > { %287 = vpow2.f32 %v134_v2  ;;  %p323_p12 = pnand %p322_p6, %p572_p11  ;;  %s325_s3 = sshll.u32 %s390_s10, 4  ;;  %s326_s3 = int_to_ptr.vmem [resolvable:$false] %s325_s3 }
  0x3d   : > { %s327_s4 = scalar_lea.vmem %s326_s3, 256  ;;  %p328_p7 = scmp.lt.s32.totalorder %s515_s26, %s326_s3 }
  0x3e   : > { %p324_p13 = pneg %p323_p12  ;;  %p329_p10 = scmp.lt.s32.totalorder %s327_s4, %s321_s2 }
  0x40   : > { %p330_p2 = por %p329_p10, %p328_p7 }
  0x42   : > { %p331_p4 = pnand %p330_p2, %p324_p13 }
  0x46   : > { %v288_v3 = vpop.eup %287 }
  0x47   : > { %v136_v4 = vadd.f32 2.0, %v288_v3 }
  0x49   : > { %v137_v5 = vmul.f32 %v288_v3, %v136_v4 }
  0x4b   : > { %v138_v6 = vadd.f32 2.0, %v137_v5  ;;  %v140_v7 = vmul.f32 %v137_v5, %v132_v0 }
  0x4d   : > { %289 = vrcp.f32 %v138_v6 }
  0x57   : > { %v290_v8 = vpop.eup %289 }
  0x58   : > { %v141_v9 = vmul.f32 %v290_v8, %v140_v7 }
  0x5a   : > { %v143_v10 = vsel %vm142_vm0, %v132_v0, %v141_v9 }
  0x5b   : > { %144 = vst [vmem:[%s131_s25] sm:$0xff] %v143_v10 }
  0x5c   : > { %334 = shalt.err (!%p331_p4)
}
  0x5d   : > { %s335_s5 = scalar_lea.hbm %s520_s29, 128  ;;  %s339_s14 = scalar_lea.hbm %s563_s1, 256 }
  0x5e   : > { %p336_p5 = scmp.ne.s32.totalorder %s520_s29, %s335_s5  ;;  %p340_p0 = scmp.lt.u32.totalorder %s520_s29, %s563_s1 }
  0x5f   : > { %p341_p1 = scmp.lt.u32.totalorder %s339_s14, %s335_s5  ;;  %p343_p6 = scmp.lt.u32.totalorder %s335_s5, %s520_s29 }
  0x60   : > { %p337_p8 = pnand %p336_p5, %p572_p11 }
  0x61   : > { %p342_p3 = por %p341_p1, %p340_p0 }
  0x62   : > { %p338_p9 = pneg %p337_p8 }
  0x63   : > { %p344_p12 = por %p343_p6, %p342_p3 }
  0x65   : > { %p345_p13 = pnand %p344_p12, %p338_p9 }
  0x67   : > { %348 = shalt.err (!%p345_p13)
}
  0x68   : > { %243 = dma.vmem_to_hbm [thread:$0]  (%p572_p11), %s515_s26, 128, %s520_s29, %s146_s30  }
  0x69 PF: > { %s171_s21 = sand.u32 1, %s375_s6   ;;  %p573_p7 = scmp.ne.s32.totalorder %s568_s19, 0 }
  0x6a   : > { %p574_p10 = scmp.ge.s32.totalorder %s387_s9, 2  ;;  %s172_s22 = scalar_lea.sflag [#allocation4], %s171_s21 }
  0x6c   : > { %p250_p2 = pnand %p574_p10, %p573_p7 }
  0x6e   : > { %370 = dma.done.wait (!%p250_p2), %s172_s22, 128  }
  0x6f   : > { %372 = vsyncadd (!%p250_p2), %s172_s22, 4294967168  ;;  %p14_p4 = scmp.ge.s32.totalorder %s426_s12, 4   ;;  %s575_s6 = smov %s379_s7 }
  0x70   : > { %s576_s7 = smov %s383_s8  ;;  %s577_s8 = smov %s438_s15 }
  0x71   : > { %s578_s9 = smov %s426_s12  ;;  %16 = sbr.rel (!%p14_p4) target bundleno = 5 (0x5), region = 69 }
  0x78   :  { %177 = vsyncpa [#allocation3], 1 }
  0x79   :  { %179 = vsyncpa [#allocation3 + $0x1], 1 }
  0x7a   :  { %180 = vsyncpa [#allocation4], 1 }
  0x7b   :  { %182 = vsyncpa [#allocation4 + $0x1], 1 }

</bundles_post_ra>
